<compile_context>
chip_gen: v7x
topology: tpu7x:2x2x1
jax: 0.10.0
libtpu: 0.0.40
codegen_flags: <defaults>
</compile_context>

<pallas_src>
import functools

import jax
import jax.numpy as jnp
from jax import lax
from jax.experimental import pallas as pl
from jax.experimental.pallas import tpu as pltpu


def basic_block_kernel(x_ref, w1_ref, b1_ref, w2_ref, b2_ref, out_ref, *, H):
    """Fused conv3x3+BN1+ReLU -> conv3x3+BN2 -> +identity -> ReLU.

    x_ref   : (R, W*C)      activations, R = (#images in this block) * H
    w1_ref  : (3*W*C, W*C)  conv1 block-Toeplitz weight (BN1 scale folded in)
    b1_ref  : (1, W*C)      BN1 shift, tiled over w
    w2_ref  : (3*W*C, W*C)  conv2 block-Toeplitz weight (BN2 scale folded in)
    b2_ref  : (1, W*C)      BN2 shift, tiled over w
    out_ref : (R, W*C)
    """
    R, WC = out_ref.shape
    x2 = x_ref[...]

    # Row index within an image (r % H); h-shifts must not leak across images.
    h_idx = lax.broadcasted_iota(jnp.int32, (R, WC), 0) % H
    ok_up = h_idx > 0            # rows with a valid h-1 neighbour
    ok_dn = h_idx < (H - 1)      # rows with a valid h+1 neighbour
    zrow = jnp.zeros((1, WC), jnp.float32)

    def taps(a):
        # [ read h-1 | read h | read h+1 ], zero at image (and block) borders.
        up = jnp.where(ok_up, jnp.concatenate([zrow, a[:-1, :]], axis=0), 0.0)
        dn = jnp.where(ok_dn, jnp.concatenate([a[1:, :], zrow], axis=0), 0.0)
        return jnp.concatenate([up, a, dn], axis=1)           # (R, 3*W*C)

    # conv1 + bn1 + relu  — single MXU matmul, lane-aligned K and N dims.
    h1 = jnp.dot(taps(x2), w1_ref[...], preferred_element_type=jnp.float32)
    h1 = jnp.maximum(h1 + b1_ref[...], 0.0)

    # conv2 + bn2 — single MXU matmul.
    h2 = jnp.dot(taps(h1), w2_ref[...], preferred_element_type=jnp.float32)
    h2 = h2 + b2_ref[...]

    # identity shortcut (stride=1, in_planes == planes) + final ReLU
    out_ref[...] = jnp.maximum(h2 + x2, 0.0)


def _fold_conv_bn_weight(w_hwio, scale, W):
    """(3,3,C,C) HWIO conv weight -> (3*W*C, W*C) block-Toeplitz matmul weight.

    Row block kh holds sum_kw kron(shift_W(kw-1), w[kh, kw]); the shift matrix
    realizes the w-tap offset AND its zero padding.  BN scale (per output
    channel) is folded into the columns.
    """
    C = w_hwio.shape[-1]
    row_blocks = []
    for kh in range(3):
        blk = jnp.zeros((W * C, W * C), w_hwio.dtype)
        for kw in range(3):
            shift = jnp.eye(W, k=-(kw - 1), dtype=w_hwio.dtype)
            blk = blk + jnp.kron(shift, w_hwio[kh, kw])
        row_blocks.append(blk)
    wcat = jnp.concatenate(row_blocks, axis=0)                 # (3*W*C, W*C)
    return wcat * jnp.tile(scale, W)[None, :]


def basic_block(x_nhwc, w1, w2, g1, be1, m1, v1, g2, be2, m2, v2, eps=1e-5):
    N, H, W, C = x_nhwc.shape
    WC = W * C

    # Fold BatchNorm (inference mode) into per-channel scale/shift.
    s1 = g1 / jnp.sqrt(v1 + eps)
    b1 = be1 - m1 * s1
    s2 = g2 / jnp.sqrt(v2 + eps)
    b2 = be2 - m2 * s2

    # One-time weight preparation (tiny tensors).
    w1k = _fold_conv_bn_weight(w1, s1, W)
    w2k = _fold_conv_bn_weight(w2, s2, W)
    b1t = jnp.tile(b1, W).reshape(1, WC)
    b2t = jnp.tile(b2, W).reshape(1, WC)

    # Lane-dense slab layout: (N*H, W*C); row-major reshape, no data movement.
    x2 = x_nhwc.reshape(N * H, WC)

    # Whole batch in one grid step (M = N*H rows).  For large N, tile whole
    # images per step (rows must stay a multiple of H).
    rows = N * H
    kernel = functools.partial(basic_block_kernel, H=H)

    out2 = pl.pallas_call(
        kernel,
        out_shape=jax.ShapeDtypeStruct((N * H, WC), jnp.float32),
        grid_spec=pltpu.PrefetchScalarGridSpec(
            num_scalar_prefetch=0,
            grid=(N * H // rows,),
            in_specs=[
                pl.BlockSpec((rows, WC), lambda i: (i, 0)),
                pl.BlockSpec((3 * WC, WC), lambda i: (0, 0)),
                pl.BlockSpec((1, WC), lambda i: (0, 0)),
                pl.BlockSpec((3 * WC, WC), lambda i: (0, 0)),
                pl.BlockSpec((1, WC), lambda i: (0, 0)),
            ],
            out_specs=pl.BlockSpec((rows, WC), lambda i: (i, 0)),
        ),
        compiler_params=pltpu.CompilerParams(
            dimension_semantics=("parallel",)),
    )(x2, w1k, b1t, w2k, b2t)

    return out2.reshape(N, H, W, C)


def reference_block(x, w1, w2, g1, be1, m1, v1, g2, be2, m2, v2, eps=1e-5):
    dn = ('NHWC', 'HWIO', 'NHWC')
    y = lax.conv_general_dilated(x, w1, (1, 1), [(1, 1), (1, 1)],
                                 dimension_numbers=dn)
    y = (y - m1) / jnp.sqrt(v1 + eps) * g1 + be1
    y = jnp.maximum(y, 0.0)
    z = lax.conv_general_dilated(y, w2, (1, 1), [(1, 1), (1, 1)],
                                 dimension_numbers=dn)
    z = (z - m2) / jnp.sqrt(v2 + eps) * g2 + be2
    return jnp.maximum(z + x, 0.0)


if __name__ == "__main__":
    # Small shapes: batch=2, planes=in_planes=8, spatial=16x16, stride=1.
    # W*C = 128 -> the working layout is exactly one lane-width wide.
    N, C, H, W = 2, 8, 16, 16
    eps = 1e-5

    key = jax.random.PRNGKey(0)
    ks = jax.random.split(key, 8)

    # NCHW input (PyTorch convention) -> transpose to NHWC for the kernel.
    x_nchw = jax.random.normal(ks[0], (N, C, H, W), jnp.float32)
    x_nhwc = jnp.transpose(x_nchw, (0, 2, 3, 1))

    # Conv weights (HWIO, no bias, as in the module).
    w1 = jax.random.normal(ks[1], (3, 3, C, C), jnp.float32) * 0.1
    w2 = jax.random.normal(ks[2], (3, 3, C, C), jnp.float32) * 0.1

    # BatchNorm parameters / running stats.
    g1 = 1.0 + 0.1 * jax.random.normal(ks[3], (C,), jnp.float32)
    be1 = 0.1 * jax.random.normal(ks[4], (C,), jnp.float32)
    m1 = 0.05 * jax.random.normal(ks[5], (C,), jnp.float32)
    v1 = 1.0 + 0.1 * jax.random.uniform(ks[5], (C,), jnp.float32)
    g2 = 1.0 + 0.1 * jax.random.normal(ks[6], (C,), jnp.float32)
    be2 = 0.1 * jax.random.normal(ks[7], (C,), jnp.float32)
    m2 = 0.05 * jax.random.normal(ks[6], (C,), jnp.float32)
    v2 = 1.0 + 0.1 * jax.random.uniform(ks[7], (C,), jnp.float32)

    out = basic_block(x_nhwc, w1, w2, g1, be1, m1, v1, g2, be2, m2, v2, eps)
    out = jax.block_until_ready(out)

    ref = reference_block(x_nhwc, w1, w2, g1, be1, m1, v1, g2, be2, m2, v2, eps)
    ref = jax.block_until_ready(ref)

    assert out.shape == (N, H, W, C)
    assert jnp.allclose(out, ref, atol=2e-4, rtol=2e-4), (
        float(jnp.max(jnp.abs(out - ref))))

    print("KERNEL_OK")
</pallas_src>

<mosaic_0001>
module attributes {stable_mosaic.version = 11 : i64} {
  func.func @basic_block_kernel(%arg0: i32, %arg1: memref<32x128xf32, #tpu.memory_space<vmem>>, %arg2: memref<384x128xf32, #tpu.memory_space<vmem>>, %arg3: memref<1x128xf32, #tpu.memory_space<vmem>>, %arg4: memref<384x128xf32, #tpu.memory_space<vmem>>, %arg5: memref<1x128xf32, #tpu.memory_space<vmem>>, %arg6: memref<32x128xf32, #tpu.memory_space<vmem>>) attributes {dimension_semantics = [#tpu.dimension_semantics<parallel>], iteration_bounds = array<i64: 1>, scalar_prefetch = 0 : i64, scratch_operands = 0 : i64, tpu.core_type = #tpu.core_type<tc>, window_params = [{transform_indices = @transform_0, window_bounds = array<i64: 32, 128>}, {pipeline_mode = #tpu.pipeline_mode<synchronous>, transform_indices = @transform_1, window_bounds = array<i64: 384, 128>}, {pipeline_mode = #tpu.pipeline_mode<synchronous>, transform_indices = @transform_2, window_bounds = array<i64: 1, 128>}, {pipeline_mode = #tpu.pipeline_mode<synchronous>, transform_indices = @transform_3, window_bounds = array<i64: 384, 128>}, {pipeline_mode = #tpu.pipeline_mode<synchronous>, transform_indices = @transform_4, window_bounds = array<i64: 1, 128>}, {transform_indices = @transform_5, window_bounds = array<i64: 32, 128>}]} {
    %c0 = arith.constant 0 : index
    %c0_0 = arith.constant 0 : index
    %0 = vector.load %arg1[%c0, %c0_0] : memref<32x128xf32, #tpu.memory_space<vmem>>, vector<32x128xf32>
    %1 = tpu.iota {dimensions = array<i32: 0>} : vector<32x128xi32>
    %c16_i32 = arith.constant 16 : i32
    %c0_i32 = arith.constant 0 : i32
    %2 = arith.cmpi eq, %c16_i32, %c0_i32 : i32
    %c1_i32 = arith.constant 1 : i32
    %3 = arith.select %2, %c1_i32, %c16_i32 : i32
    %4 = vector.broadcast %3 : i32 to vector<32x128xi32>
    %5 = arith.remsi %1, %4 : vector<32x128xi32>
    %c0_i32_1 = arith.constant 0 : i32
    %6 = vector.broadcast %c0_i32_1 : i32 to vector<32x128xi32>
    %7 = arith.cmpi ne, %5, %6 : vector<32x128xi32>
    %c0_i32_2 = arith.constant 0 : i32
    %8 = vector.broadcast %c0_i32_2 : i32 to vector<32x128xi32>
    %9 = arith.cmpi slt, %5, %8 : vector<32x128xi32>
    %c0_i32_3 = arith.constant 0 : i32
    %10 = arith.cmpi slt, %3, %c0_i32_3 : i32
    %11 = vector.broadcast %10 : i1 to vector<32x128xi1>
    %12 = vector.broadcast %11 : vector<32x128xi1> to vector<32x128xi1>
    %13 = arith.xori %9, %12 : vector<32x128xi1>
    %14 = arith.andi %13, %7 : vector<32x128xi1>
    %15 = vector.broadcast %3 : i32 to vector<32x128xi32>
    %16 = arith.addi %5, %15 : vector<32x128xi32>
    %17 = arith.select %14, %16, %5 : vector<32x128xi1>, vector<32x128xi32>
    %c0_i32_4 = arith.constant 0 : i32
    %18 = vector.broadcast %c0_i32_4 : i32 to vector<32x128xi32>
    %19 = arith.cmpi sgt, %17, %18 : vector<32x128xi32>
    %c15_i32 = arith.constant 15 : i32
    %20 = vector.broadcast %c15_i32 : i32 to vector<32x128xi32>
    %21 = arith.cmpi slt, %17, %20 : vector<32x128xi32>
    %cst = arith.constant 0.000000e+00 : f32
    %22 = vector.broadcast %cst : f32 to vector<1x128xf32>
    %23 = vector.extract_strided_slice %0 {offsets = [0, 0], sizes = [31, 128], strides = [1, 1]} : vector<32x128xf32> to vector<31x128xf32>
    %24 = tpu.concatenate %22, %23 in 0 : vector<1x128xf32>, vector<31x128xf32> -> vector<32x128xf32>
    %cst_5 = arith.constant 0.000000e+00 : f32
    %25 = vector.broadcast %cst_5 : f32 to vector<32x128xf32>
    %26 = arith.select %19, %24, %25 : vector<32x128xi1>, vector<32x128xf32>
    %27 = vector.extract_strided_slice %0 {offsets = [1, 0], sizes = [31, 128], strides = [1, 1]} : vector<32x128xf32> to vector<31x128xf32>
    %28 = tpu.concatenate %27, %22 in 0 : vector<31x128xf32>, vector<1x128xf32> -> vector<32x128xf32>
    %cst_6 = arith.constant 0.000000e+00 : f32
    %29 = vector.broadcast %cst_6 : f32 to vector<32x128xf32>
    %30 = arith.select %21, %28, %29 : vector<32x128xi1>, vector<32x128xf32>
    %31 = tpu.concatenate %26, %0, %30 in 1 : vector<32x128xf32>, vector<32x128xf32>, vector<32x128xf32> -> vector<32x384xf32>
    %c0_7 = arith.constant 0 : index
    %c0_8 = arith.constant 0 : index
    %32 = vector.load %arg2[%c0_7, %c0_8] : memref<384x128xf32, #tpu.memory_space<vmem>>, vector<384x128xf32>
    %cst_9 = arith.constant dense<0.000000e+00> : vector<32x128xf32>
    %33 = tpu.matmul %31, %32, %cst_9 {dimension_numbers = #tpu.dot_dimension_numbers<[1], [0], [0], [1], [0, 0, 1, 1], [], []>} : vector<32x384xf32>, vector<384x128xf32>, vector<32x128xf32> -> vector<32x128xf32>
    %c0_10 = arith.constant 0 : index
    %c0_11 = arith.constant 0 : index
    %34 = vector.load %arg3[%c0_10, %c0_11] : memref<1x128xf32, #tpu.memory_space<vmem>>, vector<1x128xf32>
    %35 = vector.broadcast %34 : vector<1x128xf32> to vector<32x128xf32>
    %36 = arith.addf %33, %35 : vector<32x128xf32>
    %cst_12 = arith.constant 0.000000e+00 : f32
    %37 = vector.broadcast %cst_12 : f32 to vector<32x128xf32>
    %38 = arith.maximumf %36, %37 : vector<32x128xf32>
    %39 = vector.extract_strided_slice %38 {offsets = [0, 0], sizes = [31, 128], strides = [1, 1]} : vector<32x128xf32> to vector<31x128xf32>
    %40 = tpu.concatenate %22, %39 in 0 : vector<1x128xf32>, vector<31x128xf32> -> vector<32x128xf32>
    %cst_13 = arith.constant 0.000000e+00 : f32
    %41 = vector.broadcast %cst_13 : f32 to vector<32x128xf32>
    %42 = arith.select %19, %40, %41 : vector<32x128xi1>, vector<32x128xf32>
    %43 = vector.extract_strided_slice %38 {offsets = [1, 0], sizes = [31, 128], strides = [1, 1]} : vector<32x128xf32> to vector<31x128xf32>
    %44 = tpu.concatenate %43, %22 in 0 : vector<31x128xf32>, vector<1x128xf32> -> vector<32x128xf32>
    %cst_14 = arith.constant 0.000000e+00 : f32
    %45 = vector.broadcast %cst_14 : f32 to vector<32x128xf32>
    %46 = arith.select %21, %44, %45 : vector<32x128xi1>, vector<32x128xf32>
    %47 = tpu.concatenate %42, %38, %46 in 1 : vector<32x128xf32>, vector<32x128xf32>, vector<32x128xf32> -> vector<32x384xf32>
    %c0_15 = arith.constant 0 : index
    %c0_16 = arith.constant 0 : index
    %48 = vector.load %arg4[%c0_15, %c0_16] : memref<384x128xf32, #tpu.memory_space<vmem>>, vector<384x128xf32>
    %cst_17 = arith.constant dense<0.000000e+00> : vector<32x128xf32>
    %49 = tpu.matmul %47, %48, %cst_17 {dimension_numbers = #tpu.dot_dimension_numbers<[1], [0], [0], [1], [0, 0, 1, 1], [], []>} : vector<32x384xf32>, vector<384x128xf32>, vector<32x128xf32> -> vector<32x128xf32>
    %c0_18 = arith.constant 0 : index
    %c0_19 = arith.constant 0 : index
    %50 = vector.load %arg5[%c0_18, %c0_19] : memref<1x128xf32, #tpu.memory_space<vmem>>, vector<1x128xf32>
    %51 = vector.broadcast %50 : vector<1x128xf32> to vector<32x128xf32>
    %52 = arith.addf %49, %51 : vector<32x128xf32>
    %53 = arith.addf %52, %0 : vector<32x128xf32>
    %cst_20 = arith.constant 0.000000e+00 : f32
    %54 = vector.broadcast %cst_20 : f32 to vector<32x128xf32>
    %55 = arith.maximumf %53, %54 : vector<32x128xf32>
    %c0_21 = arith.constant 0 : index
    %c0_22 = arith.constant 0 : index
    %56 = vector.load %arg6[%c0_21, %c0_22] : memref<32x128xf32, #tpu.memory_space<vmem>>, vector<32x128xf32>
    tpu.vector_store %arg6[%c0_21, %c0_22], %55 {strides = array<i32>} : memref<32x128xf32, #tpu.memory_space<vmem>>, vector<32x128xf32>,
    return
  }
  func.func @transform_0(%arg0: i32) -> (i32, i32) {
    %c0_i32 = arith.constant 0 : i32
    %c0_i32_0 = arith.constant 0 : i32
    return %arg0, %c0_i32 : i32, i32
  }
  func.func @transform_1(%arg0: i32) -> (i32, i32) {
    %c0_i32 = arith.constant 0 : i32
    %c0_i32_0 = arith.constant 0 : i32
    %c0_i32_1 = arith.constant 0 : i32
    return %c0_i32, %c0_i32_0 : i32, i32
  }
  func.func @transform_2(%arg0: i32) -> (i32, i32) {
    %c0_i32 = arith.constant 0 : i32
    %c0_i32_0 = arith.constant 0 : i32
    %c0_i32_1 = arith.constant 0 : i32
    return %c0_i32, %c0_i32_0 : i32, i32
  }
  func.func @transform_3(%arg0: i32) -> (i32, i32) {
    %c0_i32 = arith.constant 0 : i32
    %c0_i32_0 = arith.constant 0 : i32
    %c0_i32_1 = arith.constant 0 : i32
    return %c0_i32, %c0_i32_0 : i32, i32
  }
  func.func @transform_4(%arg0: i32) -> (i32, i32) {
    %c0_i32 = arith.constant 0 : i32
    %c0_i32_0 = arith.constant 0 : i32
    %c0_i32_1 = arith.constant 0 : i32
    return %c0_i32, %c0_i32_0 : i32, i32
  }
  func.func @transform_5(%arg0: i32) -> (i32, i32) {
    %c0_i32 = arith.constant 0 : i32
    %c0_i32_0 = arith.constant 0 : i32
    return %arg0, %c0_i32 : i32, i32
  }
}

</mosaic_0001>

<bundles_post_ra>
// kernel: tpu_custom_call.1
= control target key start
LH: loop header
LB: loop body
LE: loop exit
PB: predicated region body
PF: predicated region fallthrough
CT: control target
= control target key end

     0   :  { %10 = vsyncpa [#allocation3], 0  ;;  %s1312_s0 = inlined_call_operand.hbm [shape: f32[32,128], index: 0, kind: input, shape index: {}]   ;;  %s1313_s1 = inlined_call_operand.hbm [shape: f32[384,128], index: 1, kind: input, shape index: {}]   ;;  %s1314_s2 = inlined_call_operand.vmem [shape: f32[1,128], index: 2, kind: input, shape index: {}]   ;;  %s1315_s3 = inlined_call_operand.hbm [shape: f32[384,128], index: 3, kind: input, shape index: {}]   ;;  %s1316_s4 = inlined_call_operand.vmem [shape: f32[1,128], index: 4, kind: input, shape index: {}]   ;;  %s1317_s5 = inlined_call_operand.hbm [shape: f32[32,128], index: 5, kind: output, shape index: {}]  }
   0x1   :  { %11 = vsyncpa [#allocation6], 0 }
   0x2   :  { %12 = vsyncpa [#allocation4], 0  ;;  %s1127_s18 = smov [#allocation5]   ;;  %s1128_s20 = smov [#allocation2]  }
   0x3   :  { %s30_s19 = sshll.u32 %s1127_s18, 4  ;;  %s18_s21 = sshll.u32 %s1128_s20, 4  ;;  %s31_s19 = int_to_ptr.vmem [resolvable:$true] %s30_s19  ;;  %s1163_s21 = int_to_ptr.vmem [resolvable:$true] %s18_s21 }
   0x4   :  { %s1033_s24 = scalar_lea.hbm %s1313_s1, 6144 }
   0x5   :  { %p1034_p0 = scmp.ne.s32.totalorder %s1313_s1, %s1033_s24  ;;  %p1037_p1 = scmp.lt.u32.totalorder %s1033_s24, %s1313_s1 }
   0x7   :  { %p1039_p2 = pnand %p1037_p1, %p1034_p0 }
   0x9   :  { %1042 = shalt.err (!%p1039_p2)
}
   0xa   :  { %s1043_s29 = scalar_lea.vmem %s31_s19, 6144  ;;  %p1048_p4 = scmp.lt.s32.totalorder %s31_s19, %s31_s19 }
   0xb   :  { %p1044_p3 = scmp.ne.s32.totalorder %s31_s19, %s1043_s29  ;;  %p1049_p5 = scmp.lt.s32.totalorder %s1043_s29, %s1043_s29 }
   0xd   :  { %p1050_p6 = por %p1049_p5, %p1048_p4 }
   0xf   :  { %p1051_p7 = pnand %p1050_p6, %p1044_p3 }
  0x11   :  { %1054 = shalt.err (!%p1051_p7)
}
  0x12   :  { %s1129_s30 = smov 128   ;;  %s1130_s6 = smov 8  }
  0x13   :  { %36 = dma.hbm_to_vmem [thread:$0]  %s1313_s1, 6144, %s31_s19, [#allocation6], %s1129_s30, %s1129_s30, %s1130_s6  }
  0x14   :  { %s1055_s11 = scalar_lea.hbm %s1312_s0, 512 }
  0x15   :  { %p1056_p8 = scmp.ne.s32.totalorder %s1312_s0, %s1055_s11  ;;  %p1059_p9 = scmp.lt.u32.totalorder %s1055_s11, %s1312_s0 }
  0x17   :  { %p1061_p10 = pnand %p1059_p9, %p1056_p8 }
  0x19   :  { %1064 = shalt.err (!%p1061_p10)
}
  0x1a   :  { %s1065_s16 = scalar_lea.vmem %s1163_s21, 512  ;;  %p1070_p12 = scmp.lt.s32.totalorder %s1163_s21, %s1163_s21 }
  0x1b   :  { %p1066_p11 = scmp.ne.s32.totalorder %s1163_s21, %s1065_s16  ;;  %p1071_p13 = scmp.lt.s32.totalorder %s1065_s16, %s1065_s16 }
  0x1d   :  { %p1072_p0 = por %p1071_p13, %p1070_p12 }
  0x1f   :  { %p1073_p1 = pnand %p1072_p0, %p1066_p11 }
  0x21   :  { %1076 = shalt.err (!%p1073_p1)
}
  0x22   :  { %24 = dma.hbm_to_vmem [thread:$0]  %s1312_s0, 512, %s1163_s21, [#allocation3], %s1129_s30, %s1129_s30, %s1130_s6  }
  0x23   :  { %s1131_s18 = smov [#allocation7]   ;;  %s1077_s23 = scalar_lea.hbm %s1315_s3, 6144 }
  0x24   :  { %s44_s19 = sshll.u32 %s1131_s18, 4  ;;  %p1078_p2 = scmp.ne.s32.totalorder %s1315_s3, %s1077_s23  ;;  %s45_s19 = int_to_ptr.vmem [resolvable:$true] %s44_s19 }
  0x25   :  { %p1081_p3 = scmp.lt.u32.totalorder %s1077_s23, %s1315_s3 }
  0x27   :  { %p1083_p4 = pnand %p1081_p3, %p1078_p2 }
  0x29   :  { %1086 = shalt.err (!%p1083_p4)
}
  0x2a   :  { %s1087_s28 = scalar_lea.vmem %s45_s19, 6144  ;;  %p1092_p6 = scmp.lt.s32.totalorder %s45_s19, %s45_s19 }
  0x2b   :  { %p1088_p5 = scmp.ne.s32.totalorder %s45_s19, %s1087_s28  ;;  %p1093_p7 = scmp.lt.s32.totalorder %s1087_s28, %s1087_s28 }
  0x2d   :  { %p1094_p8 = por %p1093_p7, %p1092_p6 }
  0x2f   :  { %p1095_p9 = pnand %p1094_p8, %p1088_p5 }
  0x31   :  { %1098 = shalt.err (!%p1095_p9)
}
  0x32   :  { %50 = dma.hbm_to_vmem [thread:$0]  %s1315_s3, 6144, %s45_s19, [#allocation6], %s1129_s30, %s1129_s30, %s1130_s6  }
  0x33   :  { %1121 = dma.done.wait [#allocation3], 512  }
  0x34   :  { %1122 = vsyncadd [#allocation3], 4294966784 }
  0x35   :  { %1123 = dma.done.wait [#allocation6], 12288  }
  0x36   :  { %1124 = vsyncadd [#allocation6], 4294955008  ;;  %v181_v0 = vld [vmem:[#allocation5 + $0x80] sm:$0xff]  ;;  %v182_v1 = vld [vmem:[#allocation5 + $0x88] sm:$0xff]  ;;  %vm148_vm0 = vcmask 1046528   ;;  %v66_v55 = vlaneseq  ;;  %vm131_vm1 = vcmask 1040384  }
  0x37   :  { %v165_v2 = vld [vmem:[#allocation5] sm:$0xff]  ;;  %v899_v3 = vpack.c.bf16 %v182_v1, %v181_v0  ;;  %v166_v4 = vld [vmem:[#allocation5 + $0x8] sm:$0xff]  ;;  %v183_v9 = vld [vmem:[#allocation5 + $0x90] sm:$0xff] }
  0x38   :  { %v197_v5 = vld [vmem:[#allocation5 + $0x100] sm:$0xff]  ;;  %v198_v6 = vld [vmem:[#allocation5 + $0x108] sm:$0xff]  ;;  %v901_v7 = vpack.c.bf16 %v166_v4, %v165_v2  ;;  %v184_v10 = vld [vmem:[#allocation5 + $0x98] sm:$0xff] }
  0x39   :  { %v931_v8 = vpack.c.bf16 %v198_v6, %v197_v5  ;;  %v167_v11 = vld [vmem:[#allocation5 + $0x10] sm:$0xff]  ;;  %900 = vmatprep.subr.bf16.mxu0 %v899_v3  ;;  %v903_v12 = vpack.c.bf16 %v184_v10, %v183_v9  ;;  %v168_v13 = vld [vmem:[#allocation5 + $0x18] sm:$0xff]  ;;  %v185_v18 = vld [vmem:[#allocation5 + $0xa0] sm:$0xff]  ;;  %v67_v3 = vshrl.u32 %v66_v55, 7 }
  0x3a   :  { %v199_v14 = vld [vmem:[#allocation5 + $0x110] sm:$0xff]  ;;  %v200_v15 = vld [vmem:[#allocation5 + $0x118] sm:$0xff]  ;;  %902 = vmatpush3.bf16.msra.mxu0 %v901_v7  ;;  %v905_v16 = vpack.c.bf16 %v168_v13, %v167_v11  ;;  %v186_v19 = vld [vmem:[#allocation5 + $0xa8] sm:$0xff] }
  0x3b   :  { %932 = vmatprep.subr.bf16.mxu1 %v931_v8  ;;  %v935_v17 = vpack.c.bf16 %v200_v15, %v199_v14  ;;  %v169_v20 = vld [vmem:[#allocation5 + $0x20] sm:$0xff]  ;;  %904 = vmatprep.subr.bf16.mxu0 %v903_v12  ;;  %v907_v21 = vpack.c.bf16 %v186_v19, %v185_v18  ;;  %v170_v22 = vld [vmem:[#allocation5 + $0x28] sm:$0xff]  ;;  %v187_v26 = vld [vmem:[#allocation5 + $0xb0] sm:$0xff]  ;;  %v68_v13 = vadd.s32 8, %v67_v3 }
  0x3c   :  { %934 = vmatpush3.bf16.msra.mxu1 %v931_v8  ;;  %v201_v23 = vld [vmem:[#allocation5 + $0x120] sm:$0xff]  ;;  %v202_v24 = vld [vmem:[#allocation5 + $0x128] sm:$0xff]  ;;  %v188_v27 = vld [vmem:[#allocation5 + $0xb8] sm:$0xff]  ;;  %v909_v30 = vpack.c.bf16 %v170_v22, %v169_v20  ;;  %v75_v22 = vand.u32 15, %v67_v3 }
  0x3d   :  { %936 = vmatprep.subr.bf16.mxu1 %v935_v17  ;;  %v939_v25 = vpack.c.bf16 %v202_v24, %v201_v23  ;;  %v203_v28 = vld [vmem:[#allocation5 + $0x130] sm:$0xff]  ;;  %v204_v29 = vld [vmem:[#allocation5 + $0x138] sm:$0xff]  ;;  %v911_v31 = vpack.c.bf16 %v188_v27, %v187_v26  ;;  %v189_v35 = vld [vmem:[#allocation5 + $0xc0] sm:$0xff]  ;;  %v82_v24 = vand.u32 15, %v68_v13  ;;  %v70_v26 = vadd.s32 24, %v67_v3 }
  0x3e   :  { %906 = vmatpush3.bf16.msra.mxu0 %v905_v16  ;;  %v171_v32 = vld [vmem:[#allocation5 + $0x30] sm:$0xff]  ;;  %v172_v33 = vld [vmem:[#allocation5 + $0x38] sm:$0xff]  ;;  %v943_v34 = vpack.c.bf16 %v204_v29, %v203_v28  ;;  %v190_v36 = vld [vmem:[#allocation5 + $0xc8] sm:$0xff]  ;;  %vm1232_vm2 = vcmp.gt.s32.totalorder %v75_v22, 0 }
  0x3f   :  { %908 = vmatprep.subr.bf16.mxu0 %v907_v21  ;;  %v205_v37 = vld [vmem:[#allocation5 + $0x140] sm:$0xff]  ;;  %v206_v38 = vld [vmem:[#allocation5 + $0x148] sm:$0xff]  ;;  %v913_v39 = vpack.c.bf16 %v172_v33, %v171_v32  ;;  %v915_v40 = vpack.c.bf16 %v190_v36, %v189_v35  ;;  %v191_v44 = vld [vmem:[#allocation5 + $0xd0] sm:$0xff]  ;;  %vm1238_vm3 = vcmp.lt.s32.totalorder %v82_v24, 15 }
  0x40   :  { %938 = vmatpush3.bf16.msra.mxu1 %v935_v17  ;;  %v173_v41 = vld [vmem:[#allocation5 + $0x40] sm:$0xff]  ;;  %v174_v42 = vld [vmem:[#allocation5 + $0x48] sm:$0xff]  ;;  %v947_v43 = vpack.c.bf16 %v206_v38, %v205_v37  ;;  %v192_v45 = vld [vmem:[#allocation5 + $0xd8] sm:$0xff]  ;;  %v69_v37 = vadd.s32 16, %v67_v3 }
  0x41   :  { %940 = vmatprep.subr.bf16.mxu1 %v939_v25  ;;  %v207_v46 = vld [vmem:[#allocation5 + $0x150] sm:$0xff]  ;;  %v208_v47 = vld [vmem:[#allocation5 + $0x158] sm:$0xff]  ;;  %v1215_v48 = vld [vmem:[#allocation2] sm:$0xff]  ;;  %v917_v49 = vpack.c.bf16 %v174_v42, %v173_v41  ;;  %v919_v52 = vpack.c.bf16 %v192_v45, %v191_v44  ;;  %v96_v42 = vand.u32 15, %v70_v26 }
  0x42   :  { %910 = vmatpush3.bf16.msra.mxu0 %v909_v30  ;;  %284 = vmatprep.mubr.f32.mxu0 %v1215_v48  ;;  %v1218_v50 = vld [vmem:[#allocation2 + $0x8] sm:$0xff]  ;;  %v149_v51 = vrot.slane %v1215_v48, 1  ;;  %v175_v53 = vld [vmem:[#allocation5 + $0x50] sm:$0xff]  ;;  %v176_v54 = vld [vmem:[#allocation5 + $0x58] sm:$0xff]  ;;  %v951_v57 = vpack.c.bf16 %v208_v47, %v207_v46  ;;  %v132_v23 = vrot.slane %v1215_v48, 7 }
  0x43   :  { %912 = vmatprep.subr.bf16.mxu0 %v911_v31  ;;  %v150_v56 = vrot.slane %v1218_v50, 1  ;;  %v193_v58 = vld [vmem:[#allocation5 + $0xe0] sm:$0xff]  ;;  %v194_v59 = vld [vmem:[#allocation5 + $0xe8] sm:$0xff]  ;;  %v921_v63 = vpack.c.bf16 %v176_v54, %v175_v53  ;;  %v195_v5 = vld [vmem:[#allocation5 + $0xf0] sm:$0xff]  ;;  %v133_v36 = vrot.slane %v1218_v50, 7  ;;  %v89_v54 = vand.u32 15, %v69_v37 }
  0x44   :  { %942 = vmatpush3.bf16.msra.mxu1 %v939_v25  ;;  %v209_v60 = vld [vmem:[#allocation5 + $0x160] sm:$0xff]  ;;  %v210_v61 = vld [vmem:[#allocation5 + $0x168] sm:$0xff]  ;;  %v923_v0 = vpack.c.bf16 %v194_v59, %v193_v58  ;;  %v196_v6 = vld [vmem:[#allocation5 + $0xf8] sm:$0xff]  ;;  %v143_v35 = vsel %vm131_vm1, 0.0, %v132_v23  ;;  %vm1253_vm4 = vcmp.lt.s32.totalorder %v96_v42, 15 }
  0x45   :  { %944 = vmatprep.subr.bf16.mxu1 %v943_v34  ;;  %v151_v62 = vsel %vm148_vm0, %v149_v51, %v150_v56  ;;  %v177_v1 = vld [vmem:[#allocation5 + $0x60] sm:$0xff]  ;;  %v178_v2 = vld [vmem:[#allocation5 + $0x68] sm:$0xff]  ;;  %v955_v4 = vpack.c.bf16 %v210_v61, %v209_v60  ;;  %v211_v7 = vld [vmem:[#allocation5 + $0x170] sm:$0xff]  ;;  %v927_v10 = vpack.c.bf16 %v196_v6, %v195_v5  ;;  %v134_v53 = vsel %vm131_vm1, %v132_v23, %v133_v36 }
  0x46   :  { %914 = vmatpush3.bf16.msra.mxu0 %v913_v39  ;;  %855 = vmatprep.mubr.f32.mxu1 %v151_v62  ;;  %v212_v8 = vld [vmem:[#allocation5 + $0x178] sm:$0xff]  ;;  %v925_v9 = vpack.c.bf16 %v178_v2, %v177_v1  ;;  %v179_v11 = vld [vmem:[#allocation5 + $0x70] sm:$0xff]  ;;  %v446_v16 = vld [vmem:[#allocation7 + $0x80] sm:$0xff]  ;;  %vm1259_vm5 = vcmp.gt.s32.totalorder %v89_v54, 0 }
  0x47   :  { %916 = vmatprep.subr.bf16.mxu0 %v915_v40  ;;  %v180_v12 = vld [vmem:[#allocation5 + $0x78] sm:$0xff]  ;;  %v959_v14 = vpack.c.bf16 %v212_v8, %v211_v7  ;;  %v1225_v15 = vld [vmem:[#allocation2 + $0x10] sm:$0xff]  ;;  %v447_v17 = vld [vmem:[#allocation7 + $0x88] sm:$0xff] }
  0x48   :  { %946 = vmatpush3.bf16.msra.mxu1 %v943_v34  ;;  %v1227_v18 = vld [vmem:[#allocation2 + $0x18] sm:$0xff]  ;;  %v462_v19 = vld [vmem:[#allocation7 + $0x100] sm:$0xff]  ;;  %v463_v20 = vld [vmem:[#allocation7 + $0x108] sm:$0xff]  ;;  %v929_v21 = vpack.c.bf16 %v180_v12, %v179_v11  ;;  %v152_v25 = vrot.slane %v1225_v15, 1  ;;  %v963_v27 = vpack.c.bf16 %v447_v17, %v446_v16  ;;  %v135_v55 = vrot.slane %v1225_v15, 7 }
  0x49   :  { %948 = vmatprep.subr.bf16.mxu1 %v947_v43  ;;  %v154_v28 = vrot.slane %v1227_v18, 1  ;;  %v430_v29 = vld [vmem:[#allocation7] sm:$0xff]  ;;  %v431_v30 = vld [vmem:[#allocation7 + $0x8] sm:$0xff]  ;;  %v995_v31 = vpack.c.bf16 %v463_v20, %v462_v19  ;;  %v448_v32 = vld [vmem:[#allocation7 + $0x90] sm:$0xff]  ;;  %v137_v5 = vrot.slane %v1227_v18, 7 }
  0x4a   :  { %918 = vmatpush3.bf16.msra.mxu0 %v917_v49  ;;  %v449_v33 = vld [vmem:[#allocation7 + $0x98] sm:$0xff]  ;;  %v464_v38 = vld [vmem:[#allocation7 + $0x110] sm:$0xff]  ;;  %v153_v41 = vsel %vm148_vm0, %v150_v56, %v152_v25  ;;  %v450_v49 = vld [vmem:[#allocation7 + $0xa0] sm:$0xff] }
  0x4b   :  { %920 = vmatprep.subr.bf16.mxu0 %v919_v52  ;;  %v465_v39 = vld [vmem:[#allocation7 + $0x118] sm:$0xff]  ;;  %v155_v44 = vsel %vm148_vm0, %v152_v25, %v154_v28  ;;  %v967_v45 = vpack.c.bf16 %v449_v33, %v448_v32  ;;  %v432_v46 = vld [vmem:[#allocation7 + $0x10] sm:$0xff]  ;;  %v451_v51 = vld [vmem:[#allocation7 + $0xa8] sm:$0xff]  ;;  %v160_v59 = vsel %vm148_vm0, %v154_v28, 0.0  ;;  %v138_v12 = vsel %vm131_vm1, %v135_v55, %v137_v5 }
  0x4c   :  { %950 = vmatpush3.bf16.msra.mxu1 %v947_v43  ;;  %v965_v43 = vpack.c.bf16 %v431_v30, %v430_v29  ;;  %v433_v47 = vld [vmem:[#allocation7 + $0x18] sm:$0xff]  ;;  %v999_v52 = vpack.c.bf16 %v465_v39, %v464_v38  ;;  %v466_v56 = vld [vmem:[#allocation7 + $0x120] sm:$0xff]  ;;  %v971_v61 = vpack.c.bf16 %v451_v51, %v450_v49  ;;  %v436_v8 = vld [vmem:[#allocation7 + $0x30] sm:$0xff] }
  0x4d   :  { %952 = vmatprep.subr.bf16.mxu1 %v951_v57  ;;  %v969_v60 = vpack.c.bf16 %v433_v47, %v432_v46  ;;  %v434_v62 = vld [vmem:[#allocation7 + $0x20] sm:$0xff]  ;;  %v453_v1 = vld [vmem:[#allocation7 + $0xb8] sm:$0xff]  ;;  %v455_v11 = vld [vmem:[#allocation7 + $0xc8] sm:$0xff] }
  0x4e   :  { %922 = vmatpush3.bf16.msra.mxu0 %v921_v63  ;;  %v435_v63 = vld [vmem:[#allocation7 + $0x28] sm:$0xff]  ;;  %v438_v16 = vld [vmem:[#allocation7 + $0x40] sm:$0xff]  ;;  %v456_v20 = vld [vmem:[#allocation7 + $0xd0] sm:$0xff] }
  0x4f   :  { %924 = vmatprep.subr.bf16.mxu0 %v923_v0  ;;  %v452_v0 = vld [vmem:[#allocation7 + $0xb0] sm:$0xff]  ;;  %v973_v6 = vpack.c.bf16 %v435_v63, %v434_v62  ;;  %v439_v17 = vld [vmem:[#allocation7 + $0x48] sm:$0xff]  ;;  %v469_v24 = vld [vmem:[#allocation7 + $0x138] sm:$0xff] }
  0x50   :  { %954 = vmatpush3.bf16.msra.mxu1 %v951_v57  ;;  %v467_v57 = vld [vmem:[#allocation7 + $0x128] sm:$0xff]  ;;  %v975_v7 = vpack.c.bf16 %v453_v1, %v452_v0  ;;  %v981_v19 = vpack.c.bf16 %v439_v17, %v438_v16  ;;  %v468_v22 = vld [vmem:[#allocation7 + $0x130] sm:$0xff]  ;;  %v441_v26 = vld [vmem:[#allocation7 + $0x58] sm:$0xff] }
  0x51   :  { %956 = vmatprep.subr.bf16.mxu1 %v955_v4  ;;  %v1003_v2 = vpack.c.bf16 %v467_v57, %v466_v56  ;;  %v440_v25 = vld [vmem:[#allocation7 + $0x50] sm:$0xff]  ;;  %v458_v29 = vld [vmem:[#allocation7 + $0xe0] sm:$0xff]  ;;  %v459_v30 = vld [vmem:[#allocation7 + $0xe8] sm:$0xff] }
  0x52   :  { %926 = vmatpush3.bf16.msra.mxu0 %v925_v9  ;;  %v437_v9 = vld [vmem:[#allocation7 + $0x38] sm:$0xff]  ;;  %v985_v28 = vpack.c.bf16 %v441_v26, %v440_v25  ;;  %v987_v32 = vpack.c.bf16 %v459_v30, %v458_v29  ;;  %v471_v33 = vld [vmem:[#allocation7 + $0x148] sm:$0xff]  ;;  %v460_v39 = vld [vmem:[#allocation7 + $0xf0] sm:$0xff] }
  0x53   :  { %928 = vmatprep.subr.bf16.mxu0 %v927_v10  ;;  %v454_v10 = vld [vmem:[#allocation7 + $0xc0] sm:$0xff]  ;;  %v977_v13 = vpack.c.bf16 %v437_v9, %v436_v8  ;;  %v443_v37 = vld [vmem:[#allocation7 + $0x68] sm:$0xff]  ;;  %v472_v42 = vld [vmem:[#allocation7 + $0x150] sm:$0xff] }
  0x54   :  { %958 = vmatpush3.bf16.msra.mxu1 %v955_v4  ;;  %v136_v4 = vsel %vm131_vm1, %v133_v36, %v135_v55  ;;  %v445_v46 = vld [vmem:[#allocation7 + $0x78] sm:$0xff]  ;;  %v474_v51 = vld [vmem:[#allocation7 + $0x160] sm:$0xff]  ;;  %v476_v54 = vld [vmem:[#allocation7 + $0x170] sm:$0xff] }
  0x55   :  { %960 = vmatprep.subr.bf16.mxu1 %v959_v14  ;;  %v477_v55 = vld [vmem:[#allocation7 + $0x178] sm:$0xff] }
  0x56   :  { %930 = vmatpush3.bf16.msra.mxu0 %v929_v21  ;;  %v457_v21 = vld [vmem:[#allocation7 + $0xd8] sm:$0xff]  ;;  %v1023_v56 = vpack.c.bf16 %v477_v55, %v476_v54 }
  0x57   :  { %964 = vmatprep.subr.bf16.mxu0 %v963_v27  ;;  %v983_v23 = vpack.c.bf16 %v457_v21, %v456_v20  ;;  %v1007_v27 = vpack.c.bf16 %v469_v24, %v468_v22 }
  0x58   :  { %962 = vmatpush3.bf16.msra.mxu1 %v959_v14  ;;  %v979_v14 = vpack.c.bf16 %v455_v11, %v454_v10 }
  0x59   :  { %996 = vmatprep.subr.bf16.mxu1 %v995_v31  ;;  %686 = vmatmul.mubr.msk.f32.vlgmr.msra.gmra.mrb[0].mxu0 %vm1232_vm2, %v143_v35  ;;  %v442_v35 = vld [vmem:[#allocation7 + $0x60] sm:$0xff] }
  0x5a   :  { %289 = vmatprep.mubr.f32.mxu0 %v1218_v50  ;;  %966 = vmatpush3.bf16.msra.mxu0 %v965_v43  ;;  %v989_v38 = vpack.c.bf16 %v443_v37, %v442_v35 }
  0x5b   :  { %856 = vmatmul.mubr.msk.f32.vlgmr.msra.gmra.mrb[0].mxu1 %vm1238_vm3, %v153_v41  ;;  %968 = vmatprep.subr.bf16.mxu0 %v967_v45  ;;  %v461_v41 = vld [vmem:[#allocation7 + $0xf8] sm:$0xff]  ;;  %v444_v45 = vld [vmem:[#allocation7 + $0x70] sm:$0xff] }
  0x5c   :  { %858 = vmatprep.mubr.f32.mxu1 %v155_v44  ;;  %998 = vmatpush3.bf16.msra.mxu1 %v995_v31  ;;  %v470_v31 = vld [vmem:[#allocation7 + $0x140] sm:$0xff]  ;;  %v991_v43 = vpack.c.bf16 %v461_v41, %v460_v39  ;;  %v473_v44 = vld [vmem:[#allocation7 + $0x158] sm:$0xff]  ;;  %v993_v49 = vpack.c.bf16 %v445_v46, %v444_v45 }
  0x5d   :  { %290 = vmatmul.mubr.f32.gmra.mrb[2].mxu0 %v134_v53  ;;  %1000 = vmatprep.subr.bf16.mxu1 %v999_v52  ;;  %v1011_v36 = vpack.c.bf16 %v471_v33, %v470_v31  ;;  %v1015_v47 = vpack.c.bf16 %v473_v44, %v472_v42  ;;  %v690_v46 = vld [vmem:[%s1316_s4] ss:$0 sm:$0xff]  ;;  %s1132_s4 = smov [#allocation8]  }
  0x5e   :  { %294 = vmatprep.mubr.f32.mxu0 %v1225_v15  ;;  %970 = vmatpush3.bf16.msra.mxu0 %v969_v60  ;;  %s672_s8 = sshll.u32 %s1132_s4, 4  ;;  %s673_s8 = int_to_ptr.vmem [resolvable:$true] %s672_s8 }
  0x5f   :  { %859 = vmatmul.mubr.msk.f32.gmra.mrb[2].mxu1 %vm1253_vm4, %v160_v59  ;;  %972 = vmatprep.subr.bf16.mxu0 %v971_v61  ;;  %v685_v61 = vld [vmem:[%s1314_s2] ss:$0 sm:$0xff]  ;;  %s1099_s9 = scalar_lea.vmem %s673_s8, 512  ;;  %p1104_p11 = scmp.lt.s32.totalorder %s673_s8, %s673_s8 }
  0x60   :  { %1002 = vmatpush3.bf16.msra.mxu1 %v999_v52  ;;  %v475_v52 = vld [vmem:[#allocation7 + $0x168] sm:$0xff]  ;;  %p1100_p10 = scmp.ne.s32.totalorder %s673_s8, %s1099_s9  ;;  %p1105_p12 = scmp.lt.s32.totalorder %s1099_s9, %s1099_s9 }
  0x61   :  { %687 = vmatmul.mubr.msk.f32.gmra.mrb[4].mxu0 %vm1259_vm5, %v136_v4  ;;  %1004 = vmatprep.subr.bf16.mxu1 %v1003_v2  ;;  %v1019_v53 = vpack.c.bf16 %v475_v52, %v474_v51 }
  0x62   :  { %299 = vmatprep.mubr.f32.mxu0 %v1227_v18  ;;  %974 = vmatpush3.bf16.msra.mxu0 %v973_v6  ;;  %p1106_p13 = por %p1105_p12, %p1104_p11 }
  0x63   :  { %976 = vmatprep.subr.bf16.mxu0 %v975_v7 }
  0x64   :  { %1006 = vmatpush3.bf16.msra.mxu1 %v1003_v2  ;;  %p1107_p0 = pnand %p1106_p13, %p1100_p10 }
  0x65   :  { %300 = vmatmul.mubr.f32.gmra.mrb[6].mxu0 %v138_v12  ;;  %1008 = vmatprep.subr.bf16.mxu1 %v1007_v27 }
  0x66   :  { %978 = vmatpush3.bf16.msra.mxu0 %v977_v13 }
  0x67   :  { %980 = vmatprep.subr.bf16.mxu0 %v979_v14 }
  0x68   :  { %1010 = vmatpush3.bf16.msra.mxu1 %v1007_v27 }
  0x69   :  { %1012 = vmatprep.subr.bf16.mxu1 %v1011_v36 }
  0x6a   :  { %982 = vmatpush3.bf16.msra.mxu0 %v981_v19 }
  0x6b   :  { %984 = vmatprep.subr.bf16.mxu0 %v983_v23 }
  0x6c   :  { %1014 = vmatpush3.bf16.msra.mxu1 %v1011_v36 }
  0x6d   :  { %1016 = vmatprep.subr.bf16.mxu1 %v1015_v47 }
  0x6e   :  { %986 = vmatpush3.bf16.msra.mxu0 %v985_v28 }
  0x6f   :  { %988 = vmatprep.subr.bf16.mxu0 %v987_v32 }
  0x70   :  { %1018 = vmatpush3.bf16.msra.mxu1 %v1015_v47 }
  0x71   :  { %1020 = vmatprep.subr.bf16.mxu1 %v1019_v53 }
  0x72   :  { %990 = vmatpush3.bf16.msra.mxu0 %v989_v38 }
  0x73   :  { %992 = vmatprep.subr.bf16.mxu0 %v991_v43 }
  0x74   :  { %1022 = vmatpush3.bf16.msra.mxu1 %v1019_v53 }
  0x75   :  { %1024 = vmatprep.subr.bf16.mxu1 %v1023_v56 }
  0x76   :  { %994 = vmatpush3.bf16.msra.mxu0 %v993_v49 }
  0x78   :  { %1026 = vmatpush3.bf16.msra.mxu1 %v1023_v56 }
 0x12c   :  { %v727_v57 = vpop.f32.mrb[0].mxu0 }
 0x12d   :  { %v728_v59 = vpop.f32.mrb[1].mxu0 }
 0x12e   :  { %v857_v60 = vpop.f32.mrb[0].mxu1  ;;  %v729_v62 = vadd.f32 %v728_v59, %v727_v57 }
 0x12f   :  { %v371_v63 = vpop.f32.mrb[1].mxu1 }
 0x130   :  { %v730_v0 = vpop.f32.mrb[2].mxu0  ;;  %v287_v1 = vadd.f32 %v729_v62, %v685_v61 }
 0x131   :  { %v731_v2 = vpop.f32.mrb[3].mxu0 }
 0x132   :  { %v860_v4 = vpop.f32.mrb[2].mxu1  ;;  %v372_v5 = vadd.f32 %v371_v63, %v287_v1  ;;  %v732_v6 = vadd.f32 %v731_v2, %v730_v0 }
 0x133   :  { %v381_v7 = vpop.f32.mrb[3].mxu1 }
 0x134   :  { %v390_v8 = vmax.f32 %v372_v5, 0.0  ;;  %v292_v9 = vadd.f32 %v732_v6, %v685_v61  ;;  %v733_v10 = vpop.f32.mrb[4].mxu0 }
 0x135   :  { %v734_v11 = vpop.f32.mrb[5].mxu0 }
 0x136   :  { %v398_v12 = vrot.slane %v390_v8, 7  ;;  %v735_v13 = vadd.f32 %v734_v11, %v733_v10  ;;  %549 = vmatprep.mubr.f32.mxu0 %v390_v8  ;;  %v377_v14 = vadd.f32 %v857_v60, %v292_v9  ;;  %v414_v21 = vrot.slane %v390_v8, 1 }
 0x138   :  { %v409_v16 = vsel %vm131_vm1, 0.0, %v398_v12  ;;  %v736_v17 = vpop.f32.mrb[6].mxu0  ;;  %v297_v19 = vadd.f32 %v735_v13, %v685_v61  ;;  %v391_v20 = vmax.f32 %v377_v14, 0.0 }
 0x139   :  { %v737_v22 = vpop.f32.mrb[7].mxu0  ;;  %691 = vmatmul.mubr.msk.f32.vlgmr.msra.gmra.mrb[8].mxu0 %vm1232_vm2, %v409_v16 }
 0x13a   :  { %v382_v23 = vadd.f32 %v381_v7, %v297_v19  ;;  %v738_v24 = vadd.f32 %v737_v22, %v736_v17  ;;  %554 = vmatprep.mubr.f32.mxu0 %v391_v20  ;;  %v399_v25 = vrot.slane %v391_v20, 7  ;;  %v415_v26 = vrot.slane %v391_v20, 1 }
 0x13c   :  { %v392_v27 = vmax.f32 %v382_v23, 0.0  ;;  %v302_v28 = vadd.f32 %v738_v24, %v685_v61  ;;  %v400_v29 = vsel %vm131_vm1, %v398_v12, %v399_v25  ;;  %v416_v30 = vsel %vm148_vm0, %v414_v21, %v415_v26 }
 0x13d   :  { %555 = vmatmul.mubr.f32.gmra.mrb[10].mxu0 %v400_v29  ;;  %893 = vmatprep.mubr.f32.mxu1 %v416_v30 }
 0x13e   :  { %v401_v31 = vrot.slane %v392_v27, 7  ;;  %v417_v32 = vrot.slane %v392_v27, 1  ;;  %559 = vmatprep.mubr.f32.mxu0 %v392_v27  ;;  %v387_v33 = vadd.f32 %v860_v4, %v302_v28 }
 0x140   :  { %v402_v34 = vsel %vm131_vm1, %v399_v25, %v401_v31  ;;  %v418_v35 = vsel %vm148_vm0, %v415_v26, %v417_v32  ;;  %v393_v36 = vmax.f32 %v387_v33, 0.0 }
 0x141   :  { %692 = vmatmul.mubr.msk.f32.gmra.mrb[12].mxu0 %vm1259_vm5, %v402_v34  ;;  %894 = vmatmul.mubr.msk.f32.vlgmr.msra.gmra.mrb[4].mxu1 %vm1238_vm3, %v418_v35 }
 0x142   :  { %564 = vmatprep.mubr.f32.mxu0 %v393_v36  ;;  %v403_v37 = vrot.slane %v393_v36, 7  ;;  %v419_v38 = vrot.slane %v393_v36, 1 }
 0x144   :  { %v404_v39 = vsel %vm131_vm1, %v401_v31, %v403_v37  ;;  %v420_v41 = vsel %vm148_vm0, %v417_v32, %v419_v38  ;;  %v425_v42 = vsel %vm148_vm0, %v419_v38, 0.0 }
 0x145   :  { %565 = vmatmul.mubr.f32.gmra.mrb[14].mxu0 %v404_v39  ;;  %896 = vmatprep.mubr.f32.mxu1 %v420_v41 }
 0x146   :  { %897 = vmatmul.mubr.msk.f32.gmra.mrb[6].mxu1 %vm1253_vm4, %v425_v42 }
 0x20c   :  { %v791_v43 = vpop.f32.mrb[8].mxu0 }
 0x20d   :  { %v792_v3 = vpop.f32.mrb[9].mxu0 }
 0x20e   :  { %v793_v44 = vadd.f32 %v792_v3, %v791_v43 }
 0x210   :  { %v794_v45 = vpop.f32.mrb[10].mxu0  ;;  %v552_v53 = vadd.f32 %v793_v44, %v690_v46 }
 0x211   :  { %v795_v40 = vpop.f32.mrb[11].mxu0 }
 0x212   :  { %v796_v47 = vadd.f32 %v795_v40, %v794_v45 }
 0x214   :  { %v797_v49 = vpop.f32.mrb[12].mxu0  ;;  %v557_v51 = vadd.f32 %v796_v47, %v690_v46  ;;  %v895_v52 = vpop.f32.mrb[4].mxu1 }
 0x215   :  { %v798_v54 = vpop.f32.mrb[13].mxu0  ;;  %v636_v55 = vpop.f32.mrb[5].mxu1 }
 0x216   :  { %v642_v56 = vadd.f32 %v895_v52, %v557_v51  ;;  %v799_v57 = vadd.f32 %v798_v54, %v797_v49  ;;  %v637_v58 = vadd.f32 %v636_v55, %v552_v53 }
 0x218   :  { %v656_v59 = vadd.f32 %v642_v56, %v1218_v50  ;;  %v655_v60 = vadd.f32 %v637_v58, %v1215_v48  ;;  %v800_v61 = vpop.f32.mrb[14].mxu0  ;;  %v562_v62 = vadd.f32 %v799_v57, %v690_v46 }
 0x219   :  { %v801_v63 = vpop.f32.mrb[15].mxu0  ;;  %v898_v0 = vpop.f32.mrb[6].mxu1 }
 0x21a   :  { %v660_v1 = vmax.f32 %v656_v59, 0.0  ;;  %v659_v2 = vmax.f32 %v655_v60, 0.0  ;;  %v802_v4 = vadd.f32 %v801_v63, %v800_v61  ;;  %v646_v5 = vpop.f32.mrb[7].mxu1 }
 0x21b   :  { %v647_v6 = vadd.f32 %v646_v5, %v562_v62 }
 0x21c   :  { %664 = vst [vmem:[#allocation8 + $0x8] sm:$0xff] %v660_v1  ;;  %663 = vst [vmem:[#allocation8] sm:$0xff] %v659_v2  ;;  %v567_v7 = vadd.f32 %v802_v4, %v690_v46 }
 0x21d   :  { %v657_v8 = vadd.f32 %v647_v6, %v1225_v15 }
 0x21e   :  { %v652_v9 = vadd.f32 %v898_v0, %v567_v7 }
 0x21f   :  { %v661_v10 = vmax.f32 %v657_v8, 0.0 }
 0x220   :  { %v658_v48 = vadd.f32 %v652_v9, %v1227_v18 }
 0x221   :  { %665 = vst [vmem:[#allocation8 + $0x10] sm:$0xff] %v661_v10 }
 0x222   :  { %v662_v50 = vmax.f32 %v658_v48, 0.0 }
 0x224   :  { %666 = vst [vmem:[#allocation8 + $0x18] sm:$0xff] %v662_v50 }
 0x225   :  { %1110 = shalt.err (!%p1107_p0)
}
 0x226   :  { %s1111_s12 = scalar_lea.hbm %s1317_s5, 512 }
 0x227   :  { %p1112_p1 = scmp.ne.s32.totalorder %s1317_s5, %s1111_s12  ;;  %p1115_p2 = scmp.lt.u32.totalorder %s1111_s12, %s1317_s5 }
 0x229   :  { %p1117_p3 = pnand %p1115_p2, %p1112_p1 }
 0x22b   :  { %1120 = shalt.err (!%p1117_p3)
}
 0x22c   :  { %678 = dma.vmem_to_hbm [thread:$0]  %s673_s8, 512, %s1317_s5, [#allocation4], %s1129_s30, %s1129_s30, %s1130_s6  }
 0x22d   :  { %1125 = dma.done.wait [#allocation4], 512  }
 0x22e   :  { %1126 = vsyncadd [#allocation4], 4294966784 }
 0x22f   :  { %682 = vsyncpa [#allocation3], 1 }
 0x230   :  { %683 = vsyncpa [#allocation6], 1 }
 0x231   :  { %684 = vsyncpa [#allocation4], 1 }

</bundles_post_ra>
